<compile_context>
chip_gen: v6e
topology: v6e:2x2x1
jax: 0.10.0
libtpu: 0.0.40
codegen_flags: <defaults>
</compile_context>

<pallas_src>
import functools

import jax
import jax.numpy as jnp
from jax.experimental import pallas as pl
from jax.experimental.pallas import tpu as pltpu

LANE = 128  # TPU lane width; also the hidden width of this MLP.


def _round_up(x: int, m: int) -> int:
    return ((x + m - 1) // m) * m


# ----------------------------------------------------------------------------
# Kernel
# ----------------------------------------------------------------------------
def policy_kernel(x_ref, w1_ref, b1_ref, w2_ref, b2_ref, out_ref):
    # Hidden layer: Linear(state_dim, 128) + ReLU.
    # f32 state tile is cast to bf16 in-kernel (cheap VPU op under MXU slack);
    # MXU accumulates in f32; bias/ReLU on the VPU in f32.
    x = x_ref[...].astype(jnp.bfloat16)
    h = jnp.dot(x, w1_ref[...], preferred_element_type=jnp.float32)
    h = jnp.maximum(h + b1_ref[...], 0.0)

    # Output layer: Linear(128, A_padded=128) -- lane-dense N.
    logits = jnp.dot(h.astype(jnp.bfloat16), w2_ref[...],
                     preferred_element_type=jnp.float32)
    logits = logits + b2_ref[...]  # padded columns carry a -1e30 bias

    # Numerically stable softmax over the (lane-dense) last dim.
    m = jnp.max(logits, axis=-1, keepdims=True)
    e = jnp.exp(logits - m)                       # padded cols -> exp(-huge) = 0
    denom = jnp.sum(e, axis=-1, keepdims=True)
    # Reciprocal on the EUP slot (free next to the exp), instead of a VPU divide.
    probs = e * pl.reciprocal(denom, approx=True)
    out_ref[...] = probs.astype(out_ref.dtype)    # bf16 store: half the HBM writeback


# ----------------------------------------------------------------------------
# One-time parameter packing (hoisted out of the per-call path)
# ----------------------------------------------------------------------------
def prepare_params(w1, b1, w2, b2):
    """Pad the output layer to 128 lane-dense columns and cast weights to bf16.

    Call this ONCE (at init); the returned tuple is what policy_forward takes.
    """
    state_dim, hidden = w1.shape
    action_dim = w2.shape[1]
    b1 = jnp.asarray(b1).reshape(1, hidden).astype(jnp.float32)
    b2 = jnp.asarray(b2).reshape(1, action_dim).astype(jnp.float32)

    a_pad = (-action_dim) % LANE
    w2p = jnp.pad(w2, ((0, 0), (0, a_pad))).astype(jnp.bfloat16)
    # Padded columns get a huge negative bias so softmax assigns them ~0 prob.
    b2p = jnp.pad(b2, ((0, 0), (0, a_pad)), constant_values=-1e30)
    w1c = w1.astype(jnp.bfloat16)
    return (w1c, b1, w2p, b2p, action_dim)


# ----------------------------------------------------------------------------
# Forward wrapper
# ----------------------------------------------------------------------------
@functools.partial(jax.jit, static_argnames=("action_dim", "tile_b"))
def _policy_forward_impl(state, w1c, b1c, w2c, b2c, *, action_dim, tile_b):
    B, state_dim = state.shape
    hidden = w1c.shape[1]
    A = w2c.shape[1]  # padded (lane-dense) action dim, multiple of 128

    # ---- Batch tiling: tile_b is a multiple of 16 (bf16 sublane packing). ----
    tile_b = max(16, min(int(tile_b), _round_up(B, 16)))
    tile_b = _round_up(tile_b, 16)
    # v7x megacore: for batches worth splitting, keep >=2 tiles so the
    # "parallel" axis spans both TensorCores (no cost on v5e/v6e).
    if B >= 32:
        tile_b = min(tile_b, _round_up(pl.cdiv(B, 2), 16))
    n_tiles = pl.cdiv(B, tile_b)
    Bp = n_tiles * tile_b
    xp = state if Bp == B else jnp.pad(state, ((0, Bp - B), (0, 0)))

    cost = pl.CostEstimate(
        flops=2 * Bp * (state_dim * hidden + hidden * A),
        transcendentals=Bp * A,
        bytes_accessed=(xp.size * xp.dtype.itemsize
                        + w1c.size * w1c.dtype.itemsize
                        + w2c.size * w2c.dtype.itemsize
                        + b1c.size * b1c.dtype.itemsize
                        + b2c.size * b2c.dtype.itemsize
                        + Bp * A * 2),          # bf16 output
    )

    # VMEM per step stays tiny (<2 MiB at tile_b=2048 incl. double buffering),
    # far under even v7x's 64 MiB -- no vmem_limit_bytes override needed.
    out = pl.pallas_call(
        policy_kernel,
        out_shape=jax.ShapeDtypeStruct((Bp, A), jnp.bfloat16),
        grid_spec=pltpu.PrefetchScalarGridSpec(
            num_scalar_prefetch=0,
            grid=(n_tiles,),
            in_specs=[
                pl.BlockSpec((tile_b, state_dim), lambda i: (i, 0)),   # x tile (f32)
                pl.BlockSpec((state_dim, hidden), lambda i: (0, 0)),   # w1 (resident, bf16)
                pl.BlockSpec((1, hidden), lambda i: (0, 0)),           # b1 (f32)
                pl.BlockSpec((hidden, A), lambda i: (0, 0)),           # w2 (padded, bf16)
                pl.BlockSpec((1, A), lambda i: (0, 0)),                # b2 (padded, f32)
            ],
            out_specs=pl.BlockSpec((tile_b, A), lambda i: (i, 0)),
        ),
        compiler_params=pltpu.CompilerParams(
            dimension_semantics=("parallel",),   # lets v7x shard batch tiles over 2 TCs
        ),
        cost_estimate=cost,
    )(xp, w1c, b1c, w2c, b2c)

    # Strip batch padding + padded action columns, back to f32 probabilities.
    return out[:B, :action_dim].astype(jnp.float32)


def policy_forward(state, packed_params, *, tile_b: int = 1024):
    """Fused MLP + softmax forward.

    state: (B, state_dim) float32
    packed_params: output of prepare_params(w1, b1, w2, b2)
    Returns (B, action_dim) float32 softmax probabilities.
    """
    w1c, b1c, w2c, b2c, action_dim = packed_params
    return _policy_forward_impl(state, w1c, b1c, w2c, b2c,
                                action_dim=action_dim, tile_b=tile_b)


# ----------------------------------------------------------------------------
# Test harness
# ----------------------------------------------------------------------------
def init_params(key, state_dim, hidden_dim, action_dim):
    """Deterministic synthetic parameters (PyTorch-style uniform fan-in init)."""
    k1, k2, k3, k4 = jax.random.split(key, 4)
    bound1 = 1.0 / jnp.sqrt(state_dim)
    bound2 = 1.0 / jnp.sqrt(hidden_dim)
    w1 = jax.random.uniform(k1, (state_dim, hidden_dim), jnp.float32, -bound1, bound1)
    b1 = jax.random.uniform(k2, (1, hidden_dim), jnp.float32, -bound1, bound1)
    w2 = jax.random.uniform(k3, (hidden_dim, action_dim), jnp.float32, -bound2, bound2)
    b2 = jax.random.uniform(k4, (1, action_dim), jnp.float32, -bound2, bound2)
    return w1, b1, w2, b2


def _reference(state, w1, b1, w2, b2):
    h = jnp.maximum(state @ w1 + b1, 0.0)
    return jax.nn.softmax(h @ w2 + b2, axis=-1)


if __name__ == "__main__":
    # Small shapes consistent with the module: batch=2, state_dim=16, action_dim=8
    state_dim, hidden_dim, action_dim = 16, 128, 8

    key = jax.random.PRNGKey(0)
    k_state, k_state2, k_state3, k_params = jax.random.split(key, 4)
    w1, b1, w2, b2 = init_params(k_params, state_dim, hidden_dim, action_dim)
    packed = prepare_params(w1, b1, w2, b2)   # one-time weight prep

    # Case 1: tiny batch (matches the toy spec).
    state = jax.random.normal(k_state, (2, state_dim), dtype=jnp.float32)
    probs = jax.block_until_ready(policy_forward(state, packed))
    ref = _reference(state, w1, b1, w2, b2)
    assert probs.shape == (2, action_dim)
    assert jnp.allclose(probs, ref, atol=2e-2), "mismatch vs reference (B=2)"
    assert jnp.allclose(jnp.sum(probs, axis=-1), 1.0, atol=1e-2), "rows must sum to ~1"

    # Case 2: batched states (non-multiple of tile) exercising the batch grid.
    state2 = jax.random.normal(k_state2, (20, state_dim), dtype=jnp.float32)
    probs2 = jax.block_until_ready(policy_forward(state2, packed, tile_b=16))
    ref2 = _reference(state2, w1, b1, w2, b2)
    assert probs2.shape == (20, action_dim)
    assert jnp.allclose(probs2, ref2, atol=2e-2), "mismatch vs reference (B=20)"
    assert jnp.allclose(jnp.sum(probs2, axis=-1), 1.0, atol=1e-2), "rows must sum to ~1"

    # Case 3: larger batch with default tile_b (exercises the >=2-tile split).
    state3 = jax.random.normal(k_state3, (300, state_dim), dtype=jnp.float32)
    probs3 = jax.block_until_ready(policy_forward(state3, packed))
    ref3 = _reference(state3, w1, b1, w2, b2)
    assert probs3.shape == (300, action_dim)
    assert jnp.allclose(probs3, ref3, atol=2e-2), "mismatch vs reference (B=300)"
    assert jnp.allclose(jnp.sum(probs3, axis=-1), 1.0, atol=1e-2), "rows must sum to ~1"

    print("KERNEL_OK")
</pallas_src>

<mosaic_0001>
module attributes {stable_mosaic.version = 11 : i64} {
  func.func @policy_kernel(%arg0: i32, %arg1: memref<16x16xf32, #tpu.memory_space<vmem>>, %arg2: memref<16x128xbf16, #tpu.memory_space<vmem>>, %arg3: memref<1x128xf32, #tpu.memory_space<vmem>>, %arg4: memref<128x128xbf16, #tpu.memory_space<vmem>>, %arg5: memref<1x128xf32, #tpu.memory_space<vmem>>, %arg6: memref<16x128xbf16, #tpu.memory_space<vmem>>) attributes {dimension_semantics = [#tpu.dimension_semantics<parallel>], iteration_bounds = array<i64: 1>, scalar_prefetch = 0 : i64, scratch_operands = 0 : i64, tpu.core_type = #tpu.core_type<tc>, window_params = [{transform_indices = @transform_0, window_bounds = array<i64: 16, 16>}, {pipeline_mode = #tpu.pipeline_mode<synchronous>, transform_indices = @transform_1, window_bounds = array<i64: 16, 128>}, {pipeline_mode = #tpu.pipeline_mode<synchronous>, transform_indices = @transform_2, window_bounds = array<i64: 1, 128>}, {pipeline_mode = #tpu.pipeline_mode<synchronous>, transform_indices = @transform_3, window_bounds = array<i64: 128, 128>}, {pipeline_mode = #tpu.pipeline_mode<synchronous>, transform_indices = @transform_4, window_bounds = array<i64: 1, 128>}, {transform_indices = @transform_5, window_bounds = array<i64: 16, 128>}]} {
    %c0 = arith.constant 0 : index
    %c0_0 = arith.constant 0 : index
    %0 = vector.load %arg1[%c0, %c0_0] : memref<16x16xf32, #tpu.memory_space<vmem>>, vector<16x16xf32>
    %1 = arith.truncf %0 : vector<16x16xf32> to vector<16x16xbf16>
    %c0_1 = arith.constant 0 : index
    %c0_2 = arith.constant 0 : index
    %2 = vector.load %arg2[%c0_1, %c0_2] : memref<16x128xbf16, #tpu.memory_space<vmem>>, vector<16x128xbf16>
    %cst = arith.constant dense<0.000000e+00> : vector<16x128xf32>
    %3 = tpu.matmul %1, %2, %cst {dimension_numbers = #tpu.dot_dimension_numbers<[1], [0], [0], [1], [0, 0, 1, 1], [], []>} : vector<16x16xbf16>, vector<16x128xbf16>, vector<16x128xf32> -> vector<16x128xf32>
    %c0_3 = arith.constant 0 : index
    %c0_4 = arith.constant 0 : index
    %4 = vector.load %arg3[%c0_3, %c0_4] : memref<1x128xf32, #tpu.memory_space<vmem>>, vector<1x128xf32>
    %5 = vector.broadcast %4 : vector<1x128xf32> to vector<16x128xf32>
    %6 = arith.addf %3, %5 : vector<16x128xf32>
    %cst_5 = arith.constant 0.000000e+00 : f32
    %7 = vector.broadcast %cst_5 : f32 to vector<16x128xf32>
    %8 = arith.maximumf %6, %7 : vector<16x128xf32>
    %9 = arith.truncf %8 : vector<16x128xf32> to vector<16x128xbf16>
    %c0_6 = arith.constant 0 : index
    %c0_7 = arith.constant 0 : index
    %10 = vector.load %arg4[%c0_6, %c0_7] : memref<128x128xbf16, #tpu.memory_space<vmem>>, vector<128x128xbf16>
    %cst_8 = arith.constant dense<0.000000e+00> : vector<16x128xf32>
    %11 = tpu.matmul %9, %10, %cst_8 {dimension_numbers = #tpu.dot_dimension_numbers<[1], [0], [0], [1], [0, 0, 1, 1], [], []>} : vector<16x128xbf16>, vector<128x128xbf16>, vector<16x128xf32> -> vector<16x128xf32>
    %c0_9 = arith.constant 0 : index
    %c0_10 = arith.constant 0 : index
    %12 = vector.load %arg5[%c0_9, %c0_10] : memref<1x128xf32, #tpu.memory_space<vmem>>, vector<1x128xf32>
    %13 = vector.broadcast %12 : vector<1x128xf32> to vector<16x128xf32>
    %14 = arith.addf %11, %13 : vector<16x128xf32>
    %cst_11 = arith.constant dense<0xFF800000> : vector<16xf32>
    %15 = vector.multi_reduction <maximumf>, %14, %cst_11 [1] : vector<16x128xf32> to vector<16xf32>
    %16 = vector.shape_cast %15 : vector<16xf32> to vector<16x1xf32>
    %17 = vector.broadcast %16 : vector<16x1xf32> to vector<16x128xf32>
    %18 = arith.subf %14, %17 : vector<16x128xf32>
    %19 = math.exp %18 : vector<16x128xf32>
    %cst_12 = arith.constant dense<0.000000e+00> : vector<16xf32>
    %20 = vector.multi_reduction <add>, %19, %cst_12 [1] : vector<16x128xf32> to vector<16xf32>
    %21 = vector.shape_cast %20 : vector<16xf32> to vector<16x1xf32>
    %22 = tpu.reciprocal %21 {approx = true} : vector<16x1xf32> -> vector<16x1xf32>
    %23 = vector.broadcast %22 : vector<16x1xf32> to vector<16x128xf32>
    %24 = arith.mulf %19, %23 : vector<16x128xf32>
    %25 = arith.truncf %24 : vector<16x128xf32> to vector<16x128xbf16>
    %c0_13 = arith.constant 0 : index
    %c0_14 = arith.constant 0 : index
    %26 = vector.load %arg6[%c0_13, %c0_14] : memref<16x128xbf16, #tpu.memory_space<vmem>>, vector<16x128xbf16>
    tpu.vector_store %arg6[%c0_13, %c0_14], %25 {strides = array<i32>} : memref<16x128xbf16, #tpu.memory_space<vmem>>, vector<16x128xbf16>,
    return
  }
  func.func @transform_0(%arg0: i32) -> (i32, i32) {
    %c0_i32 = arith.constant 0 : i32
    %c0_i32_0 = arith.constant 0 : i32
    return %arg0, %c0_i32 : i32, i32
  }
  func.func @transform_1(%arg0: i32) -> (i32, i32) {
    %c0_i32 = arith.constant 0 : i32
    %c0_i32_0 = arith.constant 0 : i32
    %c0_i32_1 = arith.constant 0 : i32
    return %c0_i32, %c0_i32_0 : i32, i32
  }
  func.func @transform_2(%arg0: i32) -> (i32, i32) {
    %c0_i32 = arith.constant 0 : i32
    %c0_i32_0 = arith.constant 0 : i32
    %c0_i32_1 = arith.constant 0 : i32
    return %c0_i32, %c0_i32_0 : i32, i32
  }
  func.func @transform_3(%arg0: i32) -> (i32, i32) {
    %c0_i32 = arith.constant 0 : i32
    %c0_i32_0 = arith.constant 0 : i32
    %c0_i32_1 = arith.constant 0 : i32
    return %c0_i32, %c0_i32_0 : i32, i32
  }
  func.func @transform_4(%arg0: i32) -> (i32, i32) {
    %c0_i32 = arith.constant 0 : i32
    %c0_i32_0 = arith.constant 0 : i32
    %c0_i32_1 = arith.constant 0 : i32
    return %c0_i32, %c0_i32_0 : i32, i32
  }
  func.func @transform_5(%arg0: i32) -> (i32, i32) {
    %c0_i32 = arith.constant 0 : i32
    %c0_i32_0 = arith.constant 0 : i32
    return %arg0, %c0_i32 : i32, i32
  }
}

</mosaic_0001>

<bundles_post_ra>
// kernel: _policy_forward_impl.1
= control target key start
LH: loop header
LB: loop body
LE: loop exit
PB: predicated region body
PF: predicated region fallthrough
CT: control target
= control target key end

     0   :  { %10 = vsyncpa [#allocation3], 0  ;;  %s348_s18 = smov [#allocation2]   ;;  %s404_s0 = inlined_call_operand.vmem [shape: f32[16,16], index: 0, kind: input, shape index: {}]   ;;  %s405_s1 = inlined_call_operand.vmem [shape: bf16[16,128], index: 1, kind: input, shape index: {}]   ;;  %s406_s2 = inlined_call_operand.vmem [shape: f32[1,128], index: 2, kind: input, shape index: {}]   ;;  %s407_s3 = inlined_call_operand.hbm [shape: bf16[128,128], index: 3, kind: input, shape index: {}]   ;;  %s408_s4 = inlined_call_operand.vmem [shape: f32[1,128], index: 4, kind: input, shape index: {}]   ;;  %s409_s5 = inlined_call_operand.vmem [shape: bf16[16,128], index: 5, kind: output, shape index: {}]  }
   0x1   :  { %s22_s19 = sshll.u32 %s348_s18, 4  ;;  %s23_s19 = int_to_ptr.vmem [resolvable:$true] %s22_s19 }
   0x2   :  { %s334_s20 = scalar_lea.vmem %s23_s19, 1024  ;;  %p339_p1 = scmp.lt.s32.totalorder %s23_s19, %s23_s19 }
   0x3   :  { %p335_p0 = scmp.ne.s32.totalorder %s23_s19, %s334_s20  ;;  %p340_p2 = scmp.lt.s32.totalorder %s334_s20, %s334_s20 }
   0x5   :  { %p341_p3 = por %p340_p2, %p339_p1 }
   0x7   :  { %p342_p4 = pnand %p341_p3, %p335_p0 }
   0x9   :  { %345 = shalt.err (!%p342_p4)
}
   0xa   :  { %s349_s21 = smov 64   ;;  %s350_s22 = smov 4  }
   0xb   :  { %28 = dma.hbm_to_vmem [thread:$0]  %s407_s3, 1024, %s23_s19, [#allocation3], %s349_s21, %s349_s21, %s350_s22  }
   0xc   :  { %346 = dma.done.wait [#allocation3], 1024  }
   0xd   :  { %347 = vsyncadd [#allocation3], 4294966272  ;;  %v351_v0 = vmov 0.0   ;;  %vm352_vm0 = vmmov 0   ;;  %v309_v1 = vld [vmem:[%s405_s1] sm:$0xff]   ;;  %v36_v3 = vld [vmem:[%s404_s0 + $0x8] sm:$0xff] }
   0xe   :  { %278 = vmatprep.subr.bf16.mxu0 %v351_v0  ;;  %280 = vmatprep.mubr.msk.bf16.mxu0 %vm352_vm0, %v351_v0  ;;  %v35_v2 = vld [vmem:[%s404_s0] sm:$0xff]  ;;  %vm53_vm1 = vcmask 130048   ;;  %v310_v5 = vld [vmem:[#allocation2 + $0x38] sm:$0xff]   ;;  %v311_v6 = vld [vmem:[#allocation2 + $0x30] sm:$0xff]  }
   0xf   :  { %284 = vmatprep.subr.bf16.mxu1 %v351_v0  ;;  %300 = vmatprep.mubr.msk.bf16.mxu1 %vm352_vm0, %v351_v0  ;;  %v37_v4 = vpack.c.bf16 %v36_v3, %v35_v2  ;;  %v312_v7 = vld [vmem:[#allocation2 + $0x28] sm:$0xff]   ;;  %v313_v8 = vld [vmem:[#allocation2 + $0x20] sm:$0xff]   ;;  %v314_v9 = vld [vmem:[#allocation2 + $0x18] sm:$0xff]  }
  0x10   :  { %279 = vmatpush3.bf16.msra.mxu0 %v309_v1  ;;  %285 = vmatpush3.bf16.msra.mxu1 %v310_v5  ;;  %v315_v10 = vld [vmem:[#allocation2 + $0x10] sm:$0xff]   ;;  %v316_v11 = vld [vmem:[#allocation2 + $0x8] sm:$0xff]   ;;  %v317_v12 = vld [vmem:[#allocation2] sm:$0xff]  }
  0x11   :  { %286 = vmatprep.subr.bf16.mxu1 %v351_v0  ;;  %v246_v13 = vld [vmem:[%s406_s2] ss:$0 sm:$0xff] }
  0x12   :  { %v249_v23 = vld [vmem:[%s408_s4] ss:$0 sm:$0xff] }
  0x13   :  { %281 = vmatmul.mubr.msk.bf16.vlgmr.msra.gmra.mxu0 %vm53_vm1, %v37_v4 }
  0x14   :  { %287 = vmatpush3.bf16.msra.mxu1 %v311_v6 }
  0x15   :  { %288 = vmatprep.subr.bf16.mxu1 %v351_v0 }
  0x18   :  { %289 = vmatpush3.bf16.msra.mxu1 %v312_v7 }
  0x19   :  { %290 = vmatprep.subr.bf16.mxu1 %v351_v0 }
  0x1c   :  { %291 = vmatpush3.bf16.msra.mxu1 %v313_v8 }
  0x1d   :  { %292 = vmatprep.subr.bf16.mxu1 %v351_v0 }
  0x20   :  { %293 = vmatpush3.bf16.msra.mxu1 %v314_v9 }
  0x21   :  { %294 = vmatprep.subr.bf16.mxu1 %v351_v0 }
  0x24   :  { %295 = vmatpush3.bf16.msra.mxu1 %v315_v10 }
  0x25   :  { %296 = vmatprep.subr.bf16.mxu1 %v351_v0 }
  0x28   :  { %297 = vmatpush3.bf16.msra.mxu1 %v316_v11 }
  0x29   :  { %298 = vmatprep.subr.bf16.mxu1 %v351_v0 }
  0x2c   :  { %299 = vmatpush3.bf16.msra.mxu1 %v317_v12 }
  0xd3   :  { %v91_v14 = vpop.f32.mrf.mxu0 }
  0xd4   :  { %v92_v16 = vadd.f32 %v246_v13, %v91_v14 }
  0xd5   :  { %v282_v15 = vpop.f32.mrf.mxu0 }
  0xd6   :  { %v98_v20 = vmax.f32 %v92_v16, 0.0 }
  0xd7   :  { %v94_v17 = vpop.f32.mrf.mxu0 }
  0xd8   :  { %v95_v18 = vadd.f32 %v246_v13, %v94_v17 }
  0xd9   :  { %v283_v19 = vpop.f32.mrf.mxu0 }
  0xda   :  { %v99_v21 = vmax.f32 %v95_v18, 0.0 }
  0xdc   :  { %v100_v22 = vpack.c.bf16 %v99_v21, %v98_v20 }
  0xde   :  { %301 = vmatmul.mubr.bf16.vlgmr.msra.gmra.mxu1 %v100_v22 }
 0x19e   :  { %v206_v24 = vpop.f32.mrf.mxu1 }
 0x19f   :  { %v207_v25 = vadd.f32 %v249_v23, %v206_v24 }
 0x1a0   :  { %v302_v26 = vpop.f32.mrf.mxu1 }
 0x1a1   :  { %213 = vmax.xlane.f32.xlu0 %v207_v25 }
 0x1a2   :  { %v209_v27 = vpop.f32.mrf.mxu1 }
 0x1a3   :  { %v210_v28 = vadd.f32 %v249_v23, %v209_v27 }
 0x1a4   :  { %v303_v29 = vpop.f32.mrf.mxu1 }
 0x1a5   :  { %215 = vmax.xlane.f32.xlu0 %v210_v28 }
 0x22a   :  { %v214_v30 = vpop.xlane.xlu0 %213 }
 0x22b   :  { %v217_v31 = vsub.f32 %v207_v25, %v214_v30 }
 0x22d   :  { %v219_v32 = vmul.f32 1.442695, %v217_v31 }
 0x22e   :  { %v216_v33 = vpop.xlane.xlu0 %215 }
 0x22f   :  { %318 = vpow2.f32 %v219_v32  ;;  %v218_v34 = vsub.f32 %v210_v28, %v216_v33 }
 0x231   :  { %v221_v35 = vmul.f32 1.442695, %v218_v34 }
 0x233   :  { %320 = vpow2.f32 %v221_v35 }
 0x23c   :  { %v319_v36 = vpop.eup %318 }
 0x23d   :  { %223 = vadd.xlane.f32.xlu1 %v319_v36 }
 0x240   :  { %v321_v37 = vpop.eup %320 }
 0x241   :  { %225 = vadd.xlane.f32.xlu1 %v321_v37 }
 0x2c6   :  { %v224_v38 = vpop.xlane.xlu1 %223 }
 0x2c7   :  { %322 = vrcp.f32 %v224_v38 }
 0x2ca   :  { %v226_v39 = vpop.xlane.xlu1 %225 }
 0x2cb   :  { %324 = vrcp.f32 %v226_v39 }
 0x2d4   :  { %v323_v40 = vpop.eup %322 }
 0x2d5   :  { %v229_v42 = vmul.f32 %v323_v40, %v319_v36 }
 0x2d8   :  { %v325_v41 = vpop.eup %324 }
 0x2d9   :  { %v230_v43 = vmul.f32 %v325_v41, %v321_v37 }
 0x2db   :  { %v265_v44 = vpack.c.bf16 %v230_v43, %v229_v42 }
 0x2dd   :  { %266 = vst [vmem:[%s409_s5] sm:$0xff] %v265_v44  }
 0x2de   :  { %245 = vsyncpa [#allocation3], 1 }

</bundles_post_ra>
